<compile_context>
chip_gen: v6e
topology: v6e:2x2x1
jax: 0.10.0
libtpu: 0.0.40
codegen_flags: <defaults>
</compile_context>

<pallas_src>
import functools

import jax
import jax.numpy as jnp
import numpy as np
from jax.experimental import pallas as pl
from jax.experimental.pallas import tpu as pltpu

KSIZE = 3
DIM_IN = 4
DIM_OUT = 8


def _concat_conv_kernel(x_ref, w_ref, b_ref, o_ref, *, bsz, cin, cout, ksize, width):
    """B images (B even) of the VALID stride-1 conv; tt already folded into bias.

    x_ref: (B*Cin,  H*W)   batch on sublanes, spatial flattened on lanes
    w_ref: (2*Cout, 9*2*Cin) block-diag per tap: col = (ki*KW+kj)*2*Cin + cc
    b_ref: (2*Cout, 1)     bias_eff duplicated for the two images of a pair
    o_ref: (B*Cout, H*W)   full-width rows; wrapper strips cols >= OW / rows >= OH
    """
    hw = x_ref.shape[-1]
    kh = kw = ksize
    c2 = 2 * cin            # 8  -> one aligned sublane tile per image pair
    o2 = 2 * cout           # 16 -> aligned output slice per image pair

    w = w_ref[...]
    bias2 = jnp.broadcast_to(b_ref[...], (o2, hw))   # hoisted (no per-iter broadcast)

    for p in range(bsz // 2):                        # static unroll over image pairs
        x2 = x_ref[p * c2:(p + 1) * c2, :]           # (8, H*W), 8-aligned slice
        # im2col via lane rotations: tap (ki,kj) of the flattened image is a
        # left shift by s = ki*W + kj (roll by hw - s == jnp.roll(x, -s)).
        # Wrapped values only reach stripped columns, so no zero pad is needed.
        cols = []
        for ki in range(kh):
            for kj in range(kw):
                s = ki * width + kj
                cols.append(x2 if s == 0 else pltpu.roll(x2, shift=hw - s, axis=1))
        patch = jnp.concatenate(cols, axis=0)        # (9*2*Cin, H*W), aligned pieces
        # One MXU matmul per image pair: tap reduction in the K dimension.
        y = jnp.dot(w, patch, preferred_element_type=jnp.float32)   # (2*Cout, H*W)
        o_ref[p * o2:(p + 1) * o2, :] = y + bias2


def _pick_batch_block(n):
    """Images per grid step (n even): B even, B | n, B <= 64, and >= 2 grid
    steps when n allows (feeds both v7x TensorCores; amortizes step overhead)."""
    cands = [b for b in range(2, min(n, 64) + 1, 2) if n % b == 0]
    if not cands:
        return n
    multi = [b for b in cands if n // b >= 2]
    return max(multi) if multi else max(cands)


@jax.jit
def concat_conv2d(k, x_nchw, w_hwio, bias):
    """k: scalar; x_nchw: (N, Cin, H, W); w_hwio: (KH, KW, Cin+1, Cout); bias: (Cout,)."""
    n, cin, h, w = x_nchw.shape
    kh, kw, cin1, cout = w_hwio.shape
    assert cin1 == cin + 1 and kh == kw
    oh, ow = h - kh + 1, w - kw + 1

    # Pair-processing needs an even number of images (only copies when N is odd).
    if n % 2:
        x_nchw = jnp.concatenate(
            [x_nchw, jnp.zeros((1, cin, h, w), x_nchw.dtype)], axis=0)
    npad = x_nchw.shape[0]

    # Fold the constant tt channel into the bias (exact for padding=0 / VALID).
    bias_eff = bias + k * jnp.sum(w_hwio[:, :, 0, :], axis=(0, 1))         # (Cout,)
    b2 = jnp.concatenate([bias_eff, bias_eff]).reshape(2 * cout, 1).astype(jnp.float32)

    # Block-diagonal per-tap weights for an image pair:
    #   w2[g*Cout + o, (ki*KW+kj)*2*Cin + g*Cin + c] = w_hwio[ki, kj, c+1, o]
    w_tap = jnp.transpose(w_hwio[:, :, 1:, :], (0, 1, 3, 2))     # (kh, kw, Cout, Cin)
    z = jnp.zeros_like(w_tap)
    w_blk = jnp.concatenate(
        [jnp.concatenate([w_tap, z], axis=-1),
         jnp.concatenate([z, w_tap], axis=-1)], axis=-2)         # (kh, kw, 2Cout, 2Cin)
    w2 = jnp.transpose(w_blk, (2, 0, 1, 3)).reshape(
        2 * cout, kh * kw * 2 * cin).astype(jnp.float32)         # (16, 72)

    # Free reshape: batch folded onto sublanes, spatial flattened on lanes.
    x_flat = x_nchw.reshape(npad * cin, h * w)

    bsz = _pick_batch_block(npad)
    grid = (npad // bsz,)

    kernel = functools.partial(_concat_conv_kernel, bsz=bsz, cin=cin, cout=cout,
                               ksize=kh, width=w)

    out_flat = pl.pallas_call(
        kernel,
        out_shape=jax.ShapeDtypeStruct((npad * cout, h * w), jnp.float32),
        grid=grid,
        in_specs=[
            pl.BlockSpec((bsz * cin, h * w), lambda i: (i, 0)),
            pl.BlockSpec((2 * cout, kh * kw * 2 * cin), lambda i: (0, 0)),
            pl.BlockSpec((2 * cout, 1), lambda i: (0, 0)),
        ],
        out_specs=pl.BlockSpec((bsz * cout, h * w), lambda i: (i, 0)),
        compiler_params=pltpu.CompilerParams(
            dimension_semantics=("parallel",)),
    )(x_flat, w2, b2)

    # (Npad*Cout, H*W) -> (Npad, Cout, H, W) is a free reshape; the slice drops
    # the wrap-around rows/cols (and the padding image when N was odd).
    return out_flat.reshape(npad, cout, h, w)[:n, :, :oh, :ow]


if __name__ == "__main__":
    key = jax.random.PRNGKey(0)
    kx, kw_, kb = jax.random.split(key, 3)

    N, H, W = 2, 16, 16
    x = jax.random.normal(kx, (N, DIM_IN, H, W), dtype=jnp.float32)
    k_scalar = jnp.float32(0.5)

    # Deterministic "Conv2d(dim_in+1, dim_out, 3)" parameters (HWIO layout).
    fan_in = (DIM_IN + 1) * KSIZE * KSIZE
    bound = 1.0 / np.sqrt(fan_in)
    w_hwio = jax.random.uniform(
        kw_, (KSIZE, KSIZE, DIM_IN + 1, DIM_OUT),
        minval=-bound, maxval=bound, dtype=jnp.float32)
    bias = jax.random.uniform(
        kb, (DIM_OUT,), minval=-bound, maxval=bound, dtype=jnp.float32)

    out = jax.block_until_ready(concat_conv2d(k_scalar, x, w_hwio, bias))

    # Reference: XLA conv on the explicitly concatenated input (NCHW / OIHW),
    # identical semantics to the PyTorch module (validates the bias fold, the
    # im2col rotations, and the pair-block-diagonal weight packing).
    tt = jnp.ones_like(x[:, :1, :, :]) * k_scalar
    ttx = jnp.concatenate([tt, x], axis=1)
    w_oihw = jnp.transpose(w_hwio, (3, 2, 0, 1))
    ref = jax.lax.conv_general_dilated(
        ttx, w_oihw, window_strides=(1, 1), padding="VALID",
        dimension_numbers=("NCHW", "OIHW", "NCHW")) + bias.reshape(1, -1, 1, 1)

    assert out.shape == (N, DIM_OUT, H - KSIZE + 1, W - KSIZE + 1)
    np.testing.assert_allclose(np.asarray(out), np.asarray(ref),
                               rtol=1e-4, atol=1e-4)
    print("KERNEL_OK")
</pallas_src>

<mosaic_0001>
module attributes {stable_mosaic.version = 11 : i64} {
  func.func @_concat_conv_kernel(%arg0: i32, %arg1: memref<8x256xf32, #tpu.memory_space<vmem>>, %arg2: memref<16x72xf32, #tpu.memory_space<vmem>>, %arg3: memref<16x1xf32, #tpu.memory_space<vmem>>, %arg4: memref<16x256xf32, #tpu.memory_space<vmem>>) attributes {dimension_semantics = [#tpu.dimension_semantics<parallel>], iteration_bounds = array<i64: 1>, scalar_prefetch = 0 : i64, scratch_operands = 0 : i64, tpu.core_type = #tpu.core_type<tc>, window_params = [{transform_indices = @transform_0, window_bounds = array<i64: 8, 256>}, {pipeline_mode = #tpu.pipeline_mode<synchronous>, transform_indices = @transform_1, window_bounds = array<i64: 16, 72>}, {pipeline_mode = #tpu.pipeline_mode<synchronous>, transform_indices = @transform_2, window_bounds = array<i64: 16, 1>}, {transform_indices = @transform_3, window_bounds = array<i64: 16, 256>}]} {
    %c0 = arith.constant 0 : index
    %c0_0 = arith.constant 0 : index
    %0 = vector.load %arg2[%c0, %c0_0] : memref<16x72xf32, #tpu.memory_space<vmem>>, vector<16x72xf32>
    %c0_1 = arith.constant 0 : index
    %c0_2 = arith.constant 0 : index
    %1 = vector.load %arg3[%c0_1, %c0_2] : memref<16x1xf32, #tpu.memory_space<vmem>>, vector<16x1xf32>
    %2 = vector.shape_cast %1 : vector<16x1xf32> to vector<16x1xf32>
    %3 = vector.broadcast %2 : vector<16x1xf32> to vector<16x256xf32>
    %c0_3 = arith.constant 0 : index
    %c0_4 = arith.constant 0 : index
    %4 = vector.load %arg1[%c0_3, %c0_4] : memref<8x256xf32, #tpu.memory_space<vmem>>, vector<8x256xf32>
    %c255_i32 = arith.constant 255 : i32
    %5 = tpu.dynamic_rotate %4 by %c255_i32 dim 1 : vector<8x256xf32>, i32 -> vector<8x256xf32>
    %c254_i32 = arith.constant 254 : i32
    %6 = tpu.dynamic_rotate %4 by %c254_i32 dim 1 : vector<8x256xf32>, i32 -> vector<8x256xf32>
    %c240_i32 = arith.constant 240 : i32
    %7 = tpu.dynamic_rotate %4 by %c240_i32 dim 1 : vector<8x256xf32>, i32 -> vector<8x256xf32>
    %c239_i32 = arith.constant 239 : i32
    %8 = tpu.dynamic_rotate %4 by %c239_i32 dim 1 : vector<8x256xf32>, i32 -> vector<8x256xf32>
    %c238_i32 = arith.constant 238 : i32
    %9 = tpu.dynamic_rotate %4 by %c238_i32 dim 1 : vector<8x256xf32>, i32 -> vector<8x256xf32>
    %c224_i32 = arith.constant 224 : i32
    %10 = tpu.dynamic_rotate %4 by %c224_i32 dim 1 : vector<8x256xf32>, i32 -> vector<8x256xf32>
    %c223_i32 = arith.constant 223 : i32
    %11 = tpu.dynamic_rotate %4 by %c223_i32 dim 1 : vector<8x256xf32>, i32 -> vector<8x256xf32>
    %c222_i32 = arith.constant 222 : i32
    %12 = tpu.dynamic_rotate %4 by %c222_i32 dim 1 : vector<8x256xf32>, i32 -> vector<8x256xf32>
    %13 = tpu.concatenate %4, %5, %6, %7, %8, %9, %10, %11, %12 in 0 : vector<8x256xf32>, vector<8x256xf32>, vector<8x256xf32>, vector<8x256xf32>, vector<8x256xf32>, vector<8x256xf32>, vector<8x256xf32>, vector<8x256xf32>, vector<8x256xf32> -> vector<72x256xf32>
    %cst = arith.constant dense<0.000000e+00> : vector<16x256xf32>
    %14 = tpu.matmul %0, %13, %cst {dimension_numbers = #tpu.dot_dimension_numbers<[1], [0], [0], [1], [0, 0, 1, 1], [], []>} : vector<16x72xf32>, vector<72x256xf32>, vector<16x256xf32> -> vector<16x256xf32>
    %15 = arith.addf %14, %3 : vector<16x256xf32>
    %c0_5 = arith.constant 0 : index
    %c0_6 = arith.constant 0 : index
    %16 = vector.load %arg4[%c0_5, %c0_6] : memref<16x256xf32, #tpu.memory_space<vmem>>, vector<16x256xf32>
    tpu.vector_store %arg4[%c0_5, %c0_6], %15 {strides = array<i32>} : memref<16x256xf32, #tpu.memory_space<vmem>>, vector<16x256xf32>,
    return
  }
  func.func @transform_0(%arg0: i32) -> (i32, i32) {
    %c0_i32 = arith.constant 0 : i32
    %c0_i32_0 = arith.constant 0 : i32
    return %arg0, %c0_i32 : i32, i32
  }
  func.func @transform_1(%arg0: i32) -> (i32, i32) {
    %c0_i32 = arith.constant 0 : i32
    %c0_i32_0 = arith.constant 0 : i32
    %c0_i32_1 = arith.constant 0 : i32
    return %c0_i32, %c0_i32_0 : i32, i32
  }
  func.func @transform_2(%arg0: i32) -> (i32, i32) {
    %c0_i32 = arith.constant 0 : i32
    %c0_i32_0 = arith.constant 0 : i32
    %c0_i32_1 = arith.constant 0 : i32
    return %c0_i32, %c0_i32_0 : i32, i32
  }
  func.func @transform_3(%arg0: i32) -> (i32, i32) {
    %c0_i32 = arith.constant 0 : i32
    %c0_i32_0 = arith.constant 0 : i32
    return %arg0, %c0_i32 : i32, i32
  }
}

</mosaic_0001>

<bundles_post_ra>
// kernel: concat_conv2d.1
= control target key start
LH: loop header
LB: loop body
LE: loop exit
PB: predicated region body
PF: predicated region fallthrough
CT: control target
= control target key end

     0   :  { %s212_s14 = smov 95   ;;  %s213_s15 = smov 94   ;;  %v217_v2 = vmov 0.0   ;;  %v219_v3 = vmov 0   ;;  %v34_v6 = vlaneseq  ;;  %vm88_vm8 = vcmask 588800   ;;  %s306_s0 = inlined_call_operand.vmem [shape: f32[8,256], index: 0, kind: input, shape index: {}]   ;;  %s307_s2 = inlined_call_operand.vmem [shape: f32[16,1], index: 2, kind: input, shape index: {}]   ;;  %s308_s1 = inlined_call_operand.vmem [shape: f32[16,72], index: 1, kind: input, shape index: {}]   ;;  %s309_s3 = inlined_call_operand.vmem [shape: f32[16,256], index: 3, kind: output, shape index: {}]  }
   0x1   :  { %v245_v0 = vld [vmem:[%s306_s0] sm:$0xff]  ;;  %v252_v1 = vld [vmem:[%s306_s0 + $0x8] sm:$0xff]  ;;  %s214_s18 = smov 96   ;;  %s215_s19 = smov 110   ;;  %159 = vmatprep.mubr.f32.mxu0 %v217_v2  ;;  %165 = vmatprep.mubr.f32.mxu1 %v217_v2 }
   0x2   :  { %74 = vrot.lane.b32.xlu1 %v245_v0, %s212_s14  ;;  %81 = vrot.lane.b32.xlu0 %v245_v0, %s213_s15  ;;  %s216_s20 = smov 111   ;;  %s218_s0 = smov 112   ;;  %v17_v4 = vld [vmem:[%s307_s2 + $0x8] sm:$0xff]  ;;  %v16_v5 = vld [vmem:[%s307_s2] sm:$0xff]  ;;  %v274_v7 = vand.u32 127, %v34_v6 }
   0x3   :  { %211 = vset.pattern.permute.xlu1 %v219_v3  ;;  %210 = vset.pattern.permute.xlu0 %v219_v3  ;;  %s220_s21 = smov 126   ;;  %s221_s22 = smov 127   ;;  %v14_v40 = vld [vmem:[%s308_s1] sm:$0xff]  ;;  %v15_v41 = vld [vmem:[%s308_s1 + $0x8] sm:$0xff] }
   0x4   :  { %vm85_vm0 = vcmp.lt.s32.totalorder %v274_v7, 94  ;;  %vm78_vm1 = vcmp.lt.s32.totalorder %v274_v7, 95  ;;  %vm71_vm2 = vcmp.lt.s32.totalorder %v274_v7, 96  ;;  %vm64_vm3 = vcmp.lt.s32.totalorder %v274_v7, 110 }
   0x5   :  { %vm57_vm4 = vcmp.lt.s32.totalorder %v274_v7, 111  ;;  %vm50_vm5 = vcmp.lt.s32.totalorder %v274_v7, 112  ;;  %vm43_vm6 = vcmp.lt.s32.totalorder %v274_v7, 126  ;;  %vm36_vm7 = vcmp.lt.s32.totalorder %v274_v7, 127 }
   0x6   :  { %76 = vrot.lane.b32.xlu1 %v252_v1, %s212_s14  ;;  %83 = vrot.lane.b32.xlu0 %v252_v1, %s213_s15 }
   0xa   :  { %69 = vrot.lane.b32.xlu1 %v252_v1, %s214_s18  ;;  %67 = vrot.lane.b32.xlu0 %v245_v0, %s214_s18 }
   0xe   :  { %62 = vrot.lane.b32.xlu1 %v252_v1, %s215_s19  ;;  %60 = vrot.lane.b32.xlu0 %v245_v0, %s215_s19 }
  0x12   :  { %55 = vrot.lane.b32.xlu1 %v252_v1, %s216_s20  ;;  %53 = vrot.lane.b32.xlu0 %v245_v0, %s216_s20 }
  0x16   :  { %48 = vrot.lane.b32.xlu1 %v252_v1, %s218_s0  ;;  %46 = vrot.lane.b32.xlu0 %v245_v0, %s218_s0 }
  0x1a   :  { %41 = vrot.lane.b32.xlu1 %v252_v1, %s220_s21  ;;  %39 = vrot.lane.b32.xlu0 %v245_v0, %s220_s21 }
  0x1e   :  { %32 = vrot.lane.b32.xlu1 %v252_v1, %s221_s22  ;;  %30 = vrot.lane.b32.xlu0 %v245_v0, %s221_s22 }
  0x22   :  { %25 = vperm.xlu1 %211, %v17_v4   ;;  %20 = vperm.xlu0 %210, %v16_v5  }
  0x74   :  { %v75_v8 = vpop.permute.xlu1 %74  ;;  %v82_v9 = vpop.permute.xlu0 %81 }
  0x78   :  { %v77_v10 = vpop.permute.xlu1 %76  ;;  %v84_v11 = vpop.permute.xlu0 %83 }
  0x79   :  { %v87_v12 = vsel %vm85_vm0, %v84_v11, %v82_v9  ;;  %v86_v13 = vsel %vm85_vm0, %v82_v9, %v84_v11  ;;  %v80_v14 = vsel %vm78_vm1, %v77_v10, %v75_v8  ;;  %v79_v17 = vsel %vm78_vm1, %v75_v8, %v77_v10 }
  0x7a   :  { %109 = vmatprep.subr.mxu0 %v87_v12  ;;  %182 = vmatprep.subr.mxu1 %v87_v12 }
  0x7b   :  { %110 = vmatpush1.msra.mxu0 %v86_v13  ;;  %191 = vmatpush1.msra.mxu1 %v86_v13 }
  0x7c   :  { %v70_v15 = vpop.permute.xlu1 %69  ;;  %111 = vmatprep.subr.mxu0 %v80_v14  ;;  %183 = vmatprep.subr.mxu1 %v80_v14  ;;  %v68_v16 = vpop.permute.xlu0 %67 }
  0x7d   :  { %112 = vmatpush1.msra.mxu0 %v79_v17  ;;  %192 = vmatpush1.msra.mxu1 %v79_v17  ;;  %v73_v18 = vsel %vm71_vm2, %v70_v15, %v68_v16  ;;  %v72_v19 = vsel %vm71_vm2, %v68_v16, %v70_v15 }
  0x7e   :  { %113 = vmatprep.subr.mxu0 %v73_v18  ;;  %184 = vmatprep.subr.mxu1 %v73_v18 }
  0x7f   :  { %114 = vmatpush1.msra.mxu0 %v72_v19  ;;  %193 = vmatpush1.msra.mxu1 %v72_v19 }
  0x80   :  { %v63_v20 = vpop.permute.xlu1 %62  ;;  %v61_v21 = vpop.permute.xlu0 %60 }
  0x81   :  { %v66_v22 = vsel %vm64_vm3, %v63_v20, %v61_v21  ;;  %v65_v23 = vsel %vm64_vm3, %v61_v21, %v63_v20 }
  0x82   :  { %115 = vmatprep.subr.mxu0 %v66_v22  ;;  %185 = vmatprep.subr.mxu1 %v66_v22 }
  0x83   :  { %116 = vmatpush1.msra.mxu0 %v65_v23  ;;  %194 = vmatpush1.msra.mxu1 %v65_v23 }
  0x84   :  { %v56_v24 = vpop.permute.xlu1 %55  ;;  %v54_v25 = vpop.permute.xlu0 %53 }
  0x85   :  { %v59_v26 = vsel %vm57_vm4, %v56_v24, %v54_v25  ;;  %v58_v27 = vsel %vm57_vm4, %v54_v25, %v56_v24 }
  0x86   :  { %117 = vmatprep.subr.mxu0 %v59_v26  ;;  %186 = vmatprep.subr.mxu1 %v59_v26 }
  0x87   :  { %118 = vmatpush1.msra.mxu0 %v58_v27  ;;  %195 = vmatpush1.msra.mxu1 %v58_v27 }
  0x88   :  { %v49_v28 = vpop.permute.xlu1 %48  ;;  %v47_v29 = vpop.permute.xlu0 %46 }
  0x89   :  { %v52_v30 = vsel %vm50_vm5, %v49_v28, %v47_v29  ;;  %v51_v31 = vsel %vm50_vm5, %v47_v29, %v49_v28 }
  0x8a   :  { %119 = vmatprep.subr.mxu0 %v52_v30  ;;  %187 = vmatprep.subr.mxu1 %v52_v30 }
  0x8b   :  { %120 = vmatpush1.msra.mxu0 %v51_v31  ;;  %196 = vmatpush1.msra.mxu1 %v51_v31 }
  0x8c   :  { %v42_v32 = vpop.permute.xlu1 %41  ;;  %v40_v33 = vpop.permute.xlu0 %39 }
  0x8d   :  { %v45_v34 = vsel %vm43_vm6, %v42_v32, %v40_v33  ;;  %v44_v35 = vsel %vm43_vm6, %v40_v33, %v42_v32 }
  0x8e   :  { %121 = vmatprep.subr.mxu0 %v45_v34  ;;  %188 = vmatprep.subr.mxu1 %v45_v34 }
  0x8f   :  { %122 = vmatpush1.msra.mxu0 %v44_v35  ;;  %197 = vmatpush1.msra.mxu1 %v44_v35 }
  0x90   :  { %v33_v36 = vpop.permute.xlu1 %32  ;;  %v31_v37 = vpop.permute.xlu0 %30 }
  0x91   :  { %v38_v38 = vsel %vm36_vm7, %v33_v36, %v31_v37  ;;  %v37_v39 = vsel %vm36_vm7, %v31_v37, %v33_v36 }
  0x92   :  { %123 = vmatprep.subr.mxu0 %v38_v38  ;;  %189 = vmatprep.subr.mxu1 %v38_v38 }
  0x93   :  { %124 = vmatpush1.msra.mxu0 %v37_v39  ;;  %198 = vmatpush1.msra.mxu1 %v37_v39 }
  0x94   :  { %125 = vmatprep.subr.mxu0 %v252_v1  ;;  %190 = vmatprep.subr.mxu1 %v252_v1 }
  0x95   :  { %126 = vmatpush1.msra.mxu0 %v245_v0  ;;  %199 = vmatpush1.msra.mxu1 %v245_v0 }
  0x96   :  { %180 = vmatmul.mubr.msk.f32.vlgmr.msra.gmra.mxu0 %vm88_vm8, %v14_v40  ;;  %181 = vmatmul.mubr.msk.f32.vlgmr.msra.gmra.mxu1 %vm88_vm8, %v15_v41 }
  0x9d   :  { %v26_v42 = vpop.permute.xlu1 %25  ;;  %v21_v43 = vpop.permute.xlu0 %20 }
 0x156   :  { %v161_v44 = vpop.f32.mrf.mxu0  ;;  %v167_v45 = vpop.f32.mrf.mxu1 }
 0x157   :  { %v168_v46 = vadd.f32 %v167_v45, %v26_v42  ;;  %v162_v47 = vadd.f32 %v161_v44, %v21_v43 }
 0x158   :  { %v163_v48 = vpop.f32.mrf.mxu0  ;;  %v169_v49 = vpop.f32.mrf.mxu1 }
 0x159   :  { %174 = vst [vmem:[%s309_s3 + $0x10] sm:$0xff] %v168_v46  ;;  %172 = vst [vmem:[%s309_s3] sm:$0xff] %v162_v47  ;;  %v164_v50 = vadd.f32 %v163_v48, %v21_v43  ;;  %v170_v51 = vadd.f32 %v169_v49, %v26_v42 }
 0x15b   :  { %173 = vst [vmem:[%s309_s3 + $0x8] sm:$0xff] %v164_v50  ;;  %175 = vst [vmem:[%s309_s3 + $0x18] sm:$0xff] %v170_v51 }

</bundles_post_ra>
